<compile_context>
chip_gen: v7x
topology: tpu7x:2x2x1
jax: 0.10.0
libtpu: 0.0.40
codegen_flags: <defaults>
</compile_context>

<pallas_src>
import functools

import jax
import jax.numpy as jnp
from jax.experimental import pallas as pl
from jax.experimental.pallas import tpu as pltpu

BN_EPS = 1e-5
LANES = 128


def _round_up(x, m):
    return ((x + m - 1) // m) * m


def _pick_vmem_limit():
    # v5e/v6e: 128 MiB physical VMEM per core; v7x: 64 MiB.  Leave headroom
    # for compiler-internal scratch (review: <=~48 MiB on v7x, 64-96 on v6e).
    try:
        cap = int(pltpu.get_tpu_info().vmem_capacity_bytes)
    except Exception:  # no TPU visible yet / older API -> conservative default
        cap = 64 * 1024 * 1024
    return int(min(96 * 1024 * 1024, (cap * 3) // 4))


_VMEM_LIMIT = _pick_vmem_limit()


# ---------- Pass 1: GEMM + per-tile BN partial statistics (no conv output) ---
def _gemm_stats_kernel(patches_ref, w_ref, part_ref):
    conv = jnp.dot(patches_ref[...], w_ref[...],
                   preferred_element_type=jnp.float32)          # (TM, TN) MXU
    # Padded rows of `patches` are zero, so they contribute nothing; the true
    # element count M is divided out in the JAX fold.  Two in-place row writes
    # (no concatenate -> no extra VMEM relayout).
    part_ref[0, 0:1, :] = jnp.sum(conv, axis=0, keepdims=True)
    part_ref[0, 1:2, :] = jnp.sum(conv * conv, axis=0, keepdims=True)


# ---------- Pass 2: recompute GEMM, y = conv*scale + shift, ReLU -------------
def _gemm_apply_kernel(patches_ref, w_ref, ss_ref, out_ref):
    conv = jnp.dot(patches_ref[...], w_ref[...],
                   preferred_element_type=jnp.float32)          # (TM, TN) MXU
    y = conv * ss_ref[0:1, :] + ss_ref[1:2, :]
    out_ref[...] = jnp.maximum(y, 0.0).astype(out_ref.dtype)


@functools.partial(jax.jit,
                   static_argnames=("tm", "tn", "mxu_dtype", "channels_last"))
def conv_bn_relu(x, weight, gamma, beta, *, tm=1024, tn=None,
                 mxu_dtype=jnp.bfloat16, channels_last=False):
    """x: (N, Cin, H, W) NCHW; weight: (Cout, Cin, KH, KW). Returns f32.

    Output layout is NCHW (PyTorch semantics) unless channels_last=True.
    Only stride=1 / VALID / dilation=1 (matches the reference module).
    """
    N, Cin, H, W = x.shape
    Cout, _, KH, KW = weight.shape
    OH, OW = H - KH + 1, W - KW + 1
    M, K = N * OH * OW, Cin * KH * KW

    # Lane-dense padded sizes.  (For very large K/Cout on v6e/v7x, 256-aligned
    # padding matches the native 256x256 bf16 MXU tile; skipped here — the
    # small-K regime is mem-bound and 128 alignment is optimal on v5e.)
    kp = _round_up(K, LANES)
    cp = _round_up(Cout, LANES)

    mxu_bytes = jnp.dtype(mxu_dtype).itemsize
    row_align = 16 if mxu_bytes < 4 else 8      # bf16 packs 2 rows per sublane
    tm_eff = min(_round_up(tm, row_align), _round_up(M, row_align))
    m_pad = _round_up(M, tm_eff)
    num_m = m_pad // tm_eff

    # Cout tile: keep the whole padded Cout resident unless the weight block
    # would crowd VMEM (v7x has only 64 MiB physical; blocks double-buffer).
    if tn is None:
        max_w_bytes = 8 * 1024 * 1024
        tn = LANES
        for cand in range(LANES, cp + 1, LANES):
            if cp % cand == 0 and kp * cand * mxu_bytes <= max_w_bytes:
                tn = cand
    assert tn % LANES == 0 and cp % tn == 0
    num_n = cp // tn

    # --- im2col (wrapper-side XLA glue), in the MXU dtype to halve its traffic.
    # K ordered as (Cin, KH, KW) to match the PyTorch weight flattening order.
    xw = x.astype(mxu_dtype)
    cols = jnp.stack(
        [xw[:, :, i:i + OH, j:j + OW] for i in range(KH) for j in range(KW)],
        axis=2)                                        # (N, Cin, KH*KW, OH, OW)
    patches = (cols.reshape(N, Cin * KH * KW, OH, OW)
                   .transpose(0, 2, 3, 1)
                   .reshape(M, K))
    patches = jnp.pad(patches, ((0, m_pad - M), (0, kp - K)))      # (m_pad, kp)

    w_mat = jnp.pad(weight.reshape(Cout, K).T.astype(mxu_dtype),
                    ((0, kp - K), (0, cp - Cout)))                 # (kp, cp)
    # Padded channels get gamma = beta = 0 -> scale = shift = 0 -> output 0.
    gamma_p = jnp.pad(gamma.astype(jnp.float32), (0, cp - Cout))   # (cp,)
    beta_p = jnp.pad(beta.astype(jnp.float32), (0, cp - Cout))     # (cp,)

    # ---------------- Pass 1: per-tile partial stats (fully parallel) --------
    partials = pl.pallas_call(
        _gemm_stats_kernel,
        out_shape=jax.ShapeDtypeStruct((num_m, 2, cp), jnp.float32),
        grid=(num_n, num_m),                           # Cout-tile outer (resident w)
        in_specs=[
            pl.BlockSpec((tm_eff, kp), lambda j, i: (i, 0)),   # patches: M-tiled
            pl.BlockSpec((kp, tn), lambda j, i: (0, j)),       # weights: per-j resident
        ],
        out_specs=pl.BlockSpec((1, 2, tn), lambda j, i: (i, 0, j)),
        compiler_params=pltpu.CompilerParams(
            dimension_semantics=("parallel", "parallel"),      # megacore on v7x
            vmem_limit_bytes=_VMEM_LIMIT),
        cost_estimate=pl.CostEstimate(
            flops=2 * m_pad * kp * cp,
            transcendentals=0,
            bytes_accessed=(num_n * m_pad * kp * mxu_bytes
                            + kp * cp * mxu_bytes + num_m * 2 * cp * 4)),
    )(patches, w_mat)

    # ---------------- Tiny fold: mean/var -> scale/shift (plain JAX) ---------
    sums = jnp.sum(partials, axis=0)                   # (2, cp), f32
    inv_m = 1.0 / M
    mean = sums[0] * inv_m
    # Biased batch variance (BatchNorm2d, track_running_stats=False). Clamp
    # guards rounding / zero-padded channels.
    # TODO(synk): per-tile mean-shifted (Welford-style) partials if |mean|>>std.
    var = jnp.maximum(sums[1] * inv_m - mean * mean, 0.0)
    scale = gamma_p * jax.lax.rsqrt(var + BN_EPS)
    shift = beta_p - mean * scale
    scale_shift = jnp.stack([scale, shift], axis=0)    # (2, cp)

    # ---------------- Pass 2: recompute GEMM + scale/shift/ReLU --------------
    out_flat = pl.pallas_call(
        _gemm_apply_kernel,
        out_shape=jax.ShapeDtypeStruct((m_pad, cp), jnp.float32),
        grid=(num_n, num_m),
        in_specs=[
            pl.BlockSpec((tm_eff, kp), lambda j, i: (i, 0)),
            pl.BlockSpec((kp, tn), lambda j, i: (0, j)),
            pl.BlockSpec((2, tn), lambda j, i: (0, j)),
        ],
        out_specs=pl.BlockSpec((tm_eff, tn), lambda j, i: (i, j)),
        compiler_params=pltpu.CompilerParams(
            dimension_semantics=("parallel", "parallel"),
            vmem_limit_bytes=_VMEM_LIMIT),
        cost_estimate=pl.CostEstimate(
            flops=2 * m_pad * kp * cp + 2 * m_pad * cp,
            transcendentals=0,
            bytes_accessed=(num_n * m_pad * kp * mxu_bytes + kp * cp * mxu_bytes
                            + 2 * cp * 4 + m_pad * cp * 4)),
    )(patches, w_mat, scale_shift)

    if channels_last:
        # NHWC: only the lane-padding strip remains (one XLA copy).
        return out_flat[:M, :Cout].reshape(N, OH, OW, Cout)
    # NCHW (PyTorch module semantics).  The padding strip forces one XLA copy
    # regardless; the NHWC->NCHW transpose fuses into that same copy, so there
    # is no separate transpose pass over the output.
    return (out_flat[:M, :Cout]
            .reshape(N, OH, OW, Cout)
            .transpose(0, 3, 1, 2))


def reference(x, weight, gamma, beta):
    """Pure-JAX reference of the PyTorch ConvBN forward."""
    conv = jax.lax.conv_general_dilated(
        x.astype(jnp.float32), weight.astype(jnp.float32),
        window_strides=(1, 1), padding="VALID",
        dimension_numbers=("NCHW", "OIHW", "NCHW"))
    mean = jnp.mean(conv, axis=(0, 2, 3), keepdims=True)
    var = jnp.mean((conv - mean) ** 2, axis=(0, 2, 3), keepdims=True)
    y = (conv - mean) * jax.lax.rsqrt(var + BN_EPS)
    y = y * gamma.reshape(1, -1, 1, 1) + beta.reshape(1, -1, 1, 1)
    return jnp.maximum(y, 0.0)


if __name__ == "__main__":
    # ConvBN(in_channels=4, out_channels=8, kernel_size=3) on x (2, 4, 16, 16).
    N, Cin, H, W = 2, 4, 16, 16
    Cout, KS = 8, 3

    key = jax.random.PRNGKey(0)
    kx, kw = jax.random.split(key)
    x = jax.random.normal(kx, (N, Cin, H, W), dtype=jnp.float32)
    weight = jax.random.normal(kw, (Cout, Cin, KS, KS), dtype=jnp.float32) * 0.1
    gamma = jnp.ones((Cout,), dtype=jnp.float32)   # bn.weight default
    beta = jnp.zeros((Cout,), dtype=jnp.float32)   # bn.bias default

    ref = reference(x, weight, gamma, beta)

    # f32 MXU path with a small M tile to exercise the multi-tile partial-stats
    # path (num_m = 4).
    out_f32 = jax.block_until_ready(
        conv_bn_relu(x, weight, gamma, beta, tm=128, mxu_dtype=jnp.float32))
    assert out_f32.shape == (N, Cout, H - KS + 1, W - KS + 1)
    assert jnp.allclose(out_f32, ref, atol=1e-3, rtol=1e-3)

    # bf16 MXU fast path (default; v5e/v6e/v7x) -- looser tolerance for bf16
    # inputs (stats and normalization both use the same f32 MXU accumulation).
    out_bf16 = jax.block_until_ready(conv_bn_relu(x, weight, gamma, beta))
    assert out_bf16.shape == out_f32.shape
    assert jnp.allclose(out_bf16, ref, atol=5e-2, rtol=5e-2)

    print("KERNEL_OK")
</pallas_src>

<mosaic_0001>
module attributes {stable_mosaic.version = 11 : i64} {
  func.func @_gemm_stats_kernel(%arg0: i32, %arg1: i32, %arg2: memref<128x128xf32, #tpu.memory_space<vmem>>, %arg3: memref<128x128xf32, #tpu.memory_space<vmem>>, %arg4: memref<1x2x128xf32, #tpu.memory_space<vmem>>) attributes {dimension_semantics = [#tpu.dimension_semantics<parallel>, #tpu.dimension_semantics<parallel>], iteration_bounds = array<i64: 1, 4>, scalar_prefetch = 0 : i64, scratch_operands = 0 : i64, tpu.core_type = #tpu.core_type<tc>, window_params = [{transform_indices = @transform_0, window_bounds = array<i64: 128, 128>}, {transform_indices = @transform_1, window_bounds = array<i64: 128, 128>}, {transform_indices = @transform_2, window_bounds = array<i64: 1, 2, 128>}]} {
    %c0 = arith.constant 0 : index
    %c0_0 = arith.constant 0 : index
    %0 = vector.load %arg2[%c0, %c0_0] : memref<128x128xf32, #tpu.memory_space<vmem>>, vector<128x128xf32>
    %c0_1 = arith.constant 0 : index
    %c0_2 = arith.constant 0 : index
    %1 = vector.load %arg3[%c0_1, %c0_2] : memref<128x128xf32, #tpu.memory_space<vmem>>, vector<128x128xf32>
    %cst = arith.constant dense<0.000000e+00> : vector<128x128xf32>
    %2 = tpu.matmul %0, %1, %cst {dimension_numbers = #tpu.dot_dimension_numbers<[1], [0], [0], [1], [0, 0, 1, 1], [], []>} : vector<128x128xf32>, vector<128x128xf32>, vector<128x128xf32> -> vector<128x128xf32>
    %cst_3 = arith.constant dense<0.000000e+00> : vector<128xf32>
    %3 = vector.multi_reduction <add>, %2, %cst_3 [0] : vector<128x128xf32> to vector<128xf32>
    %4 = vector.shape_cast %3 : vector<128xf32> to vector<1x128xf32>
    %c0_4 = arith.constant 0 : index
    %c0_5 = arith.constant 0 : index
    %c0_6 = arith.constant 0 : index
    %5 = vector.load %arg4[%c0_4, %c0_5, %c0_6] : memref<1x2x128xf32, #tpu.memory_space<vmem>>, vector<1x1x128xf32>
    %6 = vector.shape_cast %5 : vector<1x1x128xf32> to vector<1x128xf32>
    %7 = vector.shape_cast %4 : vector<1x128xf32> to vector<1x1x128xf32>
    tpu.vector_store %arg4[%c0_4, %c0_5, %c0_6], %7 {strides = array<i32>} : memref<1x2x128xf32, #tpu.memory_space<vmem>>, vector<1x1x128xf32>,
    %8 = arith.mulf %2, %2 : vector<128x128xf32>
    %cst_7 = arith.constant dense<0.000000e+00> : vector<128xf32>
    %9 = vector.multi_reduction <add>, %8, %cst_7 [0] : vector<128x128xf32> to vector<128xf32>
    %10 = vector.shape_cast %9 : vector<128xf32> to vector<1x128xf32>
    %c0_8 = arith.constant 0 : index
    %c1 = arith.constant 1 : index
    %c0_9 = arith.constant 0 : index
    %11 = vector.load %arg4[%c0_8, %c1, %c0_9] : memref<1x2x128xf32, #tpu.memory_space<vmem>>, vector<1x1x128xf32>
    %12 = vector.shape_cast %11 : vector<1x1x128xf32> to vector<1x128xf32>
    %13 = vector.shape_cast %10 : vector<1x128xf32> to vector<1x1x128xf32>
    tpu.vector_store %arg4[%c0_8, %c1, %c0_9], %13 {strides = array<i32>} : memref<1x2x128xf32, #tpu.memory_space<vmem>>, vector<1x1x128xf32>,
    return
  }
  func.func @transform_0(%arg0: i32, %arg1: i32) -> (i32, i32) {
    %c0_i32 = arith.constant 0 : i32
    %c0_i32_0 = arith.constant 0 : i32
    return %arg1, %c0_i32 : i32, i32
  }
  func.func @transform_1(%arg0: i32, %arg1: i32) -> (i32, i32) {
    %c0_i32 = arith.constant 0 : i32
    %c0_i32_0 = arith.constant 0 : i32
    return %c0_i32, %arg0 : i32, i32
  }
  func.func @transform_2(%arg0: i32, %arg1: i32) -> (i32, i32, i32) {
    %c0_i32 = arith.constant 0 : i32
    %c0_i32_0 = arith.constant 0 : i32
    return %arg1, %c0_i32, %arg0 : i32, i32, i32
  }
}

module attributes {stable_mosaic.version = 11 : i64} {
  func.func @_gemm_apply_kernel(%arg0: i32, %arg1: i32, %arg2: memref<128x128xf32, #tpu.memory_space<vmem>>, %arg3: memref<128x128xf32, #tpu.memory_space<vmem>>, %arg4: memref<2x128xf32, #tpu.memory_space<vmem>>, %arg5: memref<128x128xf32, #tpu.memory_space<vmem>>) attributes {dimension_semantics = [#tpu.dimension_semantics<parallel>, #tpu.dimension_semantics<parallel>], iteration_bounds = array<i64: 1, 4>, scalar_prefetch = 0 : i64, scratch_operands = 0 : i64, tpu.core_type = #tpu.core_type<tc>, window_params = [{transform_indices = @transform_0, window_bounds = array<i64: 128, 128>}, {transform_indices = @transform_1, window_bounds = array<i64: 128, 128>}, {transform_indices = @transform_2, window_bounds = array<i64: 2, 128>}, {transform_indices = @transform_3, window_bounds = array<i64: 128, 128>}]} {
    %c0 = arith.constant 0 : index
    %c0_0 = arith.constant 0 : index
    %0 = vector.load %arg2[%c0, %c0_0] : memref<128x128xf32, #tpu.memory_space<vmem>>, vector<128x128xf32>
    %c0_1 = arith.constant 0 : index
    %c0_2 = arith.constant 0 : index
    %1 = vector.load %arg3[%c0_1, %c0_2] : memref<128x128xf32, #tpu.memory_space<vmem>>, vector<128x128xf32>
    %cst = arith.constant dense<0.000000e+00> : vector<128x128xf32>
    %2 = tpu.matmul %0, %1, %cst {dimension_numbers = #tpu.dot_dimension_numbers<[1], [0], [0], [1], [0, 0, 1, 1], [], []>} : vector<128x128xf32>, vector<128x128xf32>, vector<128x128xf32> -> vector<128x128xf32>
    %c0_3 = arith.constant 0 : index
    %c0_4 = arith.constant 0 : index
    %3 = vector.load %arg4[%c0_3, %c0_4] : memref<2x128xf32, #tpu.memory_space<vmem>>, vector<1x128xf32>
    %4 = vector.broadcast %3 : vector<1x128xf32> to vector<128x128xf32>
    %5 = arith.mulf %2, %4 : vector<128x128xf32>
    %c1 = arith.constant 1 : index
    %c0_5 = arith.constant 0 : index
    %6 = vector.load %arg4[%c1, %c0_5] : memref<2x128xf32, #tpu.memory_space<vmem>>, vector<1x128xf32>
    %7 = vector.broadcast %6 : vector<1x128xf32> to vector<128x128xf32>
    %8 = arith.addf %5, %7 : vector<128x128xf32>
    %cst_6 = arith.constant 0.000000e+00 : f32
    %9 = vector.broadcast %cst_6 : f32 to vector<128x128xf32>
    %10 = arith.maximumf %8, %9 : vector<128x128xf32>
    %c0_7 = arith.constant 0 : index
    %c0_8 = arith.constant 0 : index
    %11 = vector.load %arg5[%c0_7, %c0_8] : memref<128x128xf32, #tpu.memory_space<vmem>>, vector<128x128xf32>
    tpu.vector_store %arg5[%c0_7, %c0_8], %10 {strides = array<i32>} : memref<128x128xf32, #tpu.memory_space<vmem>>, vector<128x128xf32>,
    return
  }
  func.func @transform_0(%arg0: i32, %arg1: i32) -> (i32, i32) {
    %c0_i32 = arith.constant 0 : i32
    %c0_i32_0 = arith.constant 0 : i32
    return %arg1, %c0_i32 : i32, i32
  }
  func.func @transform_1(%arg0: i32, %arg1: i32) -> (i32, i32) {
    %c0_i32 = arith.constant 0 : i32
    %c0_i32_0 = arith.constant 0 : i32
    return %c0_i32, %arg0 : i32, i32
  }
  func.func @transform_2(%arg0: i32, %arg1: i32) -> (i32, i32) {
    %c0_i32 = arith.constant 0 : i32
    %c0_i32_0 = arith.constant 0 : i32
    return %c0_i32, %arg0 : i32, i32
  }
  func.func @transform_3(%arg0: i32, %arg1: i32) -> (i32, i32) {
    %c0_i32 = arith.constant 0 : i32
    return %arg1, %arg0 : i32, i32
  }
}

</mosaic_0001>

<bundles_post_ra>
// kernel: conv_bn_relu.2
= control target key start
LH: loop header
LB: loop body
LE: loop exit
PB: predicated region body
PF: predicated region fallthrough
CT: control target
= control target key end

     0   :  { %s715_s9 = smov 0   ;;  %s717_s10 = smov 0   ;;  %s819_s0 = inlined_call_operand.vmem [shape: f32[512,128], index: 0, kind: input, shape index: {}]   ;;  %s820_s1 = inlined_call_operand.vmem [shape: f32[128,128], index: 1, kind: input, shape index: {}]   ;;  %s821_s2 = inlined_call_operand.vmem [shape: f32[4,2,128], index: 2, kind: output, shape index: {}]  }
   0x1   :  { %s719_s11 = smov 0  }
   0x2 LB: > { %s21_s12 = sadd.s32 1, %s694_s10  ;;  %p510_p0 = scmp.ge.s32.totalorder %s698_s11, 1  ;;  %s698_s11 = sphi %s719_s11, %s12_s11   ;;  %s694_s10 = sphi %s717_s10, %s823_s10   ;;  %s690_s9 = sphi %s715_s9, %s822_s9  }
   0x3   : > { %p22_p1 = scmp.ge.s32.totalorder %s21_s12, 4  ;;  %p136_p2 = scmp.lt.s32.totalorder %s698_s11, 5 }
   0x5   : > { %s825_s12 = smov (%p22_p1, %s21_s12), 0  ;;  %p137_p3 = pnand %p510_p0, %p136_p2 }
   0x6   : > { %v197_v0 = vld [vmem:[%s820_s1] sm:$0xff] (!%p137_p3)  ;;  %v198_v1 = vld [vmem:[%s820_s1 + $0x8] sm:$0xff] (!%p137_p3)  ;;  %v199_v2 = vld [vmem:[%s820_s1 + $0x10] sm:$0xff] (!%p137_p3)  ;;  %s511_s19 = sshll.u32 (!%p137_p3), %s690_s9, 4  ;;  %p174_p5 = scmp.lt.s32.totalorder (!%p137_p3), %s690_s9, 3 }
   0x7   : > { %140 = sbr.rel (%p137_p3) target bundleno = 301 (0x12d), region = 28  ;;  %v604_v3 = vpack.c.bf16 (!%p137_p3), %v198_v1, %v197_v0  ;;  %v200_v4 = vld [vmem:[%s820_s1 + $0x18] sm:$0xff] (!%p137_p3)  ;;  %p165_p4 = scmp.lt.s32.totalorder (!%p137_p3), %s511_s19, 63  ;;  %v201_v6 = vld [vmem:[%s820_s1 + $0x20] sm:$0xff] (!%p137_p3)  ;;  %v202_v7 = vld [vmem:[%s820_s1 + $0x28] sm:$0xff] (!%p137_p3) }
   0x8   : > { %v608_v5 = vpack.c.bf16 (!%p137_p3), %v200_v4, %v199_v2  ;;  %v612_v8 = vpack.c.bf16 (!%p137_p3), %v202_v7, %v201_v6  ;;  %v203_v9 = vld [vmem:[%s820_s1 + $0x30] sm:$0xff] (!%p137_p3)  ;;  %v204_v10 = vld [vmem:[%s820_s1 + $0x38] sm:$0xff] (!%p137_p3)  ;;  %v205_v14 = vld [vmem:[%s820_s1 + $0x40] sm:$0xff] (!%p137_p3) }
   0x9   : > { %605 = vmatprep.subr.bf16.mxu0 (!%p137_p3), %v604_v3  ;;  %636 = vmatprep.subr.bf16.mxu1 (!%p137_p3), %v604_v3  ;;  %v616_v12 = vpack.c.bf16 (!%p137_p3), %v204_v10, %v203_v9  ;;  %v206_v15 = vld [vmem:[%s820_s1 + $0x48] sm:$0xff] (!%p137_p3)  ;;  %v207_v17 = vld [vmem:[%s820_s1 + $0x50] sm:$0xff] (!%p137_p3)  ;;  %v208_v18 = vld [vmem:[%s820_s1 + $0x58] sm:$0xff] (!%p137_p3) }
   0xa   : > { %607 = vmatpush3.bf16.msra.mxu0 (!%p137_p3), %v604_v3  ;;  %644 = vmatpush3.bf16.msra.mxu1 (!%p137_p3), %v604_v3  ;;  %v620_v16 = vpack.c.bf16 (!%p137_p3), %v206_v15, %v205_v14  ;;  %v624_v19 = vpack.c.bf16 (!%p137_p3), %v208_v18, %v207_v17  ;;  %v209_v20 = vld [vmem:[%s820_s1 + $0x60] sm:$0xff] (!%p137_p3)  ;;  %v210_v21 = vld [vmem:[%s820_s1 + $0x68] sm:$0xff] (!%p137_p3)  ;;  %v211_v23 = vld [vmem:[%s820_s1 + $0x70] sm:$0xff] (!%p137_p3) }
   0xb   : > { %609 = vmatprep.subr.bf16.mxu0 (!%p137_p3), %v608_v5  ;;  %637 = vmatprep.subr.bf16.mxu1 (!%p137_p3), %v608_v5  ;;  %v628_v22 = vpack.c.bf16 (!%p137_p3), %v210_v21, %v209_v20  ;;  %v212_v24 = vld [vmem:[%s820_s1 + $0x78] sm:$0xff] (!%p137_p3) }
   0xc   : > { %v632_v25 = vpack.c.bf16 (!%p137_p3), %v212_v24, %v211_v23 }
   0xe   : > { %s827_s19 = smov (!%p165_p4, %s511_s19), 63  ;;  %611 = vmatpush3.bf16.msra.mxu0 %v608_v5  ;;  %645 = vmatpush3.bf16.msra.mxu1 %v608_v5  ;;  %s829_s9 = smov (!%p174_p5, %s690_s9), 3 }
   0xf   : > { %s512_s26 = sshll.u32 %s827_s19, 3  ;;  %613 = vmatprep.subr.bf16.mxu0 %v612_v8  ;;  %638 = vmatprep.subr.bf16.mxu1 %v612_v8 }
  0x10   : > { %s763_s5 = scalar_lea.vmem %s819_s0, %s512_s26  ;;  %s513_s26 = sshll.u32 %s829_s9, 1 }
  0x11   : > { %v181_v11 = vld [vmem:[%s763_s5] sm:$0xff]  ;;  %v182_v26 = vld [vmem:[%s763_s5 + $0x8] sm:$0xff]  ;;  %v183_v28 = vld [vmem:[%s763_s5 + $0x10] sm:$0xff]  ;;  %s180_s29 = scalar_lea.vmem %s821_s2, %s513_s26 }
  0x12   : > { %v189_v13 = vld [vmem:[%s763_s5 + $0x40] sm:$0xff]  ;;  %580 = vmatprep.mubr.f32.mxu0 %v181_v11  ;;  %615 = vmatpush3.bf16.msra.mxu0 %v612_v8  ;;  %v190_v27 = vld [vmem:[%s763_s5 + $0x48] sm:$0xff]  ;;  %v191_v29 = vld [vmem:[%s763_s5 + $0x50] sm:$0xff] }
  0x13   : > { %592 = vmatprep.mubr.f32.mxu1 %v189_v13  ;;  %646 = vmatpush3.bf16.msra.mxu1 %v612_v8  ;;  %v184_v30 = vld [vmem:[%s763_s5 + $0x18] sm:$0xff]  ;;  %v185_v32 = vld [vmem:[%s763_s5 + $0x20] sm:$0xff]  ;;  %v186_v34 = vld [vmem:[%s763_s5 + $0x28] sm:$0xff] }
  0x14   : > { %617 = vmatprep.subr.bf16.mxu0 %v616_v12  ;;  %639 = vmatprep.subr.bf16.mxu1 %v616_v12  ;;  %v192_v31 = vld [vmem:[%s763_s5 + $0x58] sm:$0xff]  ;;  %v193_v33 = vld [vmem:[%s763_s5 + $0x60] sm:$0xff]  ;;  %v194_v35 = vld [vmem:[%s763_s5 + $0x68] sm:$0xff] }
  0x15   : > { %v187_v36 = vld [vmem:[%s763_s5 + $0x30] sm:$0xff]  ;;  %v188_v38 = vld [vmem:[%s763_s5 + $0x38] sm:$0xff] }
  0x16   : > { %619 = vmatpush3.bf16.msra.mxu0 %v616_v12  ;;  %v195_v37 = vld [vmem:[%s763_s5 + $0x70] sm:$0xff]  ;;  %v196_v39 = vld [vmem:[%s763_s5 + $0x78] sm:$0xff] }
  0x17   : > { %647 = vmatpush3.bf16.msra.mxu1 %v616_v12  ;;  %621 = vmatprep.subr.bf16.mxu0 %v620_v16 }
  0x18   : > { %640 = vmatprep.subr.bf16.mxu1 %v620_v16 }
  0x1a   : > { %623 = vmatpush3.bf16.msra.mxu0 %v620_v16 }
  0x1b   : > { %648 = vmatpush3.bf16.msra.mxu1 %v620_v16  ;;  %625 = vmatprep.subr.bf16.mxu0 %v624_v19 }
  0x1c   : > { %641 = vmatprep.subr.bf16.mxu1 %v624_v19 }
  0x1e   : > { %627 = vmatpush3.bf16.msra.mxu0 %v624_v19 }
  0x1f   : > { %649 = vmatpush3.bf16.msra.mxu1 %v624_v19  ;;  %629 = vmatprep.subr.bf16.mxu0 %v628_v22 }
  0x20   : > { %642 = vmatprep.subr.bf16.mxu1 %v628_v22 }
  0x22   : > { %631 = vmatpush3.bf16.msra.mxu0 %v628_v22 }
  0x23   : > { %650 = vmatpush3.bf16.msra.mxu1 %v628_v22  ;;  %633 = vmatprep.subr.bf16.mxu0 %v632_v25 }
  0x24   : > { %643 = vmatprep.subr.bf16.mxu1 %v632_v25 }
  0x26   : > { %635 = vmatpush3.bf16.msra.mxu0 %v632_v25 }
  0x27   : > { %651 = vmatpush3.bf16.msra.mxu1 %v632_v25 }
  0x29   : > { %581 = vmatmul.mubr.f32.vlgmr.msra.gmra.mrb[0].mxu0 %v182_v26 }
  0x2a   : > { %593 = vmatmul.mubr.f32.vlgmr.msra.gmra.mrb[0].mxu1 %v190_v27  ;;  %583 = vmatprep.mubr.f32.mxu0 %v183_v28 }
  0x2b   : > { %595 = vmatprep.mubr.f32.mxu1 %v191_v29 }
  0x2d   : > { %584 = vmatmul.mubr.f32.gmra.mrb[2].mxu0 %v184_v30 }
  0x2e   : > { %596 = vmatmul.mubr.f32.gmra.mrb[2].mxu1 %v192_v31  ;;  %586 = vmatprep.mubr.f32.mxu0 %v185_v32 }
  0x2f   : > { %598 = vmatprep.mubr.f32.mxu1 %v193_v33 }
  0x31   : > { %587 = vmatmul.mubr.f32.gmra.mrb[4].mxu0 %v186_v34 }
  0x32   : > { %599 = vmatmul.mubr.f32.gmra.mrb[4].mxu1 %v194_v35  ;;  %589 = vmatprep.mubr.f32.mxu0 %v187_v36 }
  0x33   : > { %601 = vmatprep.mubr.f32.mxu1 %v195_v37 }
  0x35   : > { %590 = vmatmul.mubr.f32.gmra.mrb[6].mxu0 %v188_v38 }
  0x36   : > { %602 = vmatmul.mubr.f32.gmra.mrb[6].mxu1 %v196_v39 }
  0xfc   : > { %v582_v40 = vpop.f32.mrb[0].mxu0 }
  0xfd   : > { %v594_v41 = vpop.f32.mrb[0].mxu1  ;;  %v381_v42 = vmul.f32 %v582_v40, %v582_v40  ;;  %v279_v43 = vpop.f32.mrb[1].mxu0 }
  0xfe   : > { %v319_v44 = vpop.f32.mrb[1].mxu1  ;;  %v358_v45 = vadd.f32 %v582_v40, %v279_v43  ;;  %v380_v46 = vmul.f32 %v279_v43, %v279_v43  ;;  %v389_v16 = vmul.f32 %v594_v41, %v594_v41 }
  0xff   : > { %v388_v13 = vmul.f32 %v319_v44, %v319_v44 }
 0x100   : > { %v396_v47 = vadd.f32 %v381_v42, %v380_v46  ;;  %v585_v48 = vpop.f32.mrb[2].mxu0 }
 0x101   : > { %v597_v49 = vpop.f32.mrb[2].mxu1  ;;  %v289_v50 = vpop.f32.mrb[3].mxu0  ;;  %v383_v54 = vmul.f32 %v585_v48, %v585_v48 }
 0x102   : > { %v329_v51 = vpop.f32.mrb[3].mxu1  ;;  %v359_v52 = vadd.f32 %v358_v45, %v289_v50  ;;  %v382_v53 = vmul.f32 %v289_v50, %v289_v50  ;;  %v391_v22 = vmul.f32 %v597_v49, %v597_v49 }
 0x103   : > { %v390_v19 = vmul.f32 %v329_v51, %v329_v51 }
 0x104   : > { %v397_v55 = vadd.f32 %v396_v47, %v382_v53  ;;  %v588_v56 = vpop.f32.mrb[4].mxu0  ;;  %v360_v57 = vadd.f32 %v585_v48, %v359_v52 }
 0x105   : > { %v600_v58 = vpop.f32.mrb[4].mxu1  ;;  %v299_v59 = vpop.f32.mrb[5].mxu0  ;;  %v385_v0 = vmul.f32 %v588_v56, %v588_v56 }
 0x106   : > { %v339_v60 = vpop.f32.mrb[5].mxu1  ;;  %v361_v61 = vadd.f32 %v360_v57, %v299_v59  ;;  %v384_v62 = vmul.f32 %v299_v59, %v299_v59  ;;  %v398_v63 = vadd.f32 %v397_v55, %v383_v54  ;;  %v393_v28 = vmul.f32 %v600_v58, %v600_v58 }
 0x107   : > { %v392_v25 = vmul.f32 %v339_v60, %v339_v60 }
 0x108   : > { %v399_v1 = vadd.f32 %v398_v63, %v384_v62  ;;  %v591_v2 = vpop.f32.mrb[6].mxu0  ;;  %v362_v3 = vadd.f32 %v588_v56, %v361_v61 }
 0x109   : > { %v603_v4 = vpop.f32.mrb[6].mxu1  ;;  %v309_v5 = vpop.f32.mrb[7].mxu0  ;;  %v387_v10 = vmul.f32 %v591_v2, %v591_v2 }
 0x10a   : > { %v349_v6 = vpop.f32.mrb[7].mxu1  ;;  %v363_v7 = vadd.f32 %v362_v3, %v309_v5  ;;  %v386_v8 = vmul.f32 %v309_v5, %v309_v5  ;;  %v400_v9 = vadd.f32 %v399_v1, %v385_v0  ;;  %v395_v34 = vmul.f32 %v603_v4, %v603_v4 }
 0x10b   : > { %v394_v31 = vmul.f32 %v349_v6, %v349_v6 }
 0x10c   : > { %v364_v11 = vadd.f32 %v591_v2, %v363_v7  ;;  %v401_v12 = vadd.f32 %v400_v9, %v386_v8 }
 0x10e   : > { %v402_v14 = vadd.f32 %v401_v12, %v387_v10  ;;  %v365_v15 = vadd.f32 %v364_v11, %v319_v44 }
 0x110   : > { %v403_v17 = vadd.f32 %v402_v14, %v388_v13  ;;  %v366_v18 = vadd.f32 %v594_v41, %v365_v15 }
 0x112   : > { %v367_v20 = vadd.f32 %v366_v18, %v329_v51  ;;  %v404_v21 = vadd.f32 %v403_v17, %v389_v16 }
 0x114   : > { %v405_v23 = vadd.f32 %v404_v21, %v390_v19  ;;  %v368_v24 = vadd.f32 %v597_v49, %v367_v20 }
 0x116   : > { %v369_v26 = vadd.f32 %v368_v24, %v339_v60  ;;  %v406_v27 = vadd.f32 %v405_v23, %v391_v22 }
 0x118   : > { %v407_v29 = vadd.f32 %v406_v27, %v392_v25  ;;  %v370_v30 = vadd.f32 %v600_v58, %v369_v26 }
 0x11a   : > { %v371_v32 = vadd.f32 %v370_v30, %v349_v6  ;;  %v408_v33 = vadd.f32 %v407_v29, %v393_v28 }
 0x11c   : > { %v372_v35 = vadd.f32 %v603_v4, %v371_v32  ;;  %v409_v36 = vadd.f32 %v408_v33, %v394_v31 }
 0x11e   : > { %v373_v37 = vrot.slane %v372_v35, 4  ;;  %v410_v38 = vadd.f32 %v409_v36, %v395_v34 }
 0x120   : > { %v374_v39 = vadd.f32 %v373_v37, %v372_v35  ;;  %v411_v40 = vrot.slane %v410_v38, 4 }
 0x122   : > { %v375_v41 = vrot.slane %v374_v39, 2  ;;  %v412_v42 = vadd.f32 %v411_v40, %v410_v38 }
 0x124   : > { %v376_v43 = vadd.f32 %v375_v41, %v374_v39  ;;  %v413_v44 = vrot.slane %v412_v42, 2 }
 0x126   : > { %v377_v45 = vrot.slane %v376_v43, 1  ;;  %v414_v46 = vadd.f32 %v413_v44, %v412_v42 }
 0x128   : > { %v378_v47 = vadd.f32 %v377_v45, %v376_v43  ;;  %v415_v48 = vrot.slane %v414_v46, 1 }
 0x12a   : > { %379 = vst [vmem:[%s180_s29] sm:$0x1] %v378_v47  ;;  %v416_v49 = vadd.f32 %v415_v48, %v414_v46 }
 0x12c   : > { %417 = vst [vmem:[%s180_s29 + $0x1] sm:$0x1] %v416_v49 }
 0x12d PF: > { %s12_s11 = sadd.s32 1, %s698_s11   ;;  %s822_s9 = smov %s694_s10 }
 0x12e   : > { %p9_p6 = scmp.ge.s32.totalorder %s12_s11, 6   ;;  %s823_s10 = smov %s825_s12 }
 0x130   :  { %11 = sbr.rel (!%p9_p6) target bundleno = 2 (0x2), region = 61 }

// kernel: conv_bn_relu.3
= control target key start
LH: loop header
LB: loop body
LE: loop exit
PB: predicated region body
PF: predicated region fallthrough
CT: control target
= control target key end

     0   :  { %s803_s12 = smov 0   ;;  %s805_s13 = smov 0   ;;  %s969_s0 = inlined_call_operand.vmem [shape: f32[512,128], index: 0, kind: input, shape index: {}]   ;;  %s970_s1 = inlined_call_operand.vmem [shape: f32[128,128], index: 1, kind: input, shape index: {}]   ;;  %s971_s2 = inlined_call_operand.vmem [shape: f32[2,128], index: 2, kind: input, shape index: {}]   ;;  %s972_s3 = inlined_call_operand.vmem [shape: f32[512,128], index: 3, kind: output, shape index: {}]  }
   0x1   :  { %s807_s14 = smov 0  }
   0x2 LB: > { %s22_s15 = sadd.s32 1, %s777_s13  ;;  %p590_p0 = scmp.ge.s32.totalorder %s781_s14, 1  ;;  %s781_s14 = sphi %s807_s14, %s13_s14   ;;  %s777_s13 = sphi %s805_s13, %s974_s13   ;;  %s773_s12 = sphi %s803_s12, %s973_s12  }
   0x3   : > { %p23_p1 = scmp.ge.s32.totalorder %s22_s15, 4  ;;  %p170_p2 = scmp.lt.s32.totalorder %s781_s14, 5 }
   0x5   : > { %s976_s15 = smov (%p23_p1, %s22_s15), 0  ;;  %p171_p3 = pnand %p590_p0, %p170_p2 }
   0x6   : > { %v244_v0 = vld [vmem:[%s970_s1] sm:$0xff] (!%p171_p3)  ;;  %v245_v1 = vld [vmem:[%s970_s1 + $0x8] sm:$0xff] (!%p171_p3)  ;;  %v246_v2 = vld [vmem:[%s970_s1 + $0x10] sm:$0xff] (!%p171_p3)  ;;  %s591_s22 = sshll.u32 (!%p171_p3), %s773_s12, 4 }
   0x7   : > { %174 = sbr.rel (%p171_p3) target bundleno = 274 (0x112), region = 32  ;;  %v687_v3 = vpack.c.bf16 (!%p171_p3), %v245_v1, %v244_v0  ;;  %v247_v4 = vld [vmem:[%s970_s1 + $0x18] sm:$0xff] (!%p171_p3)  ;;  %p206_p4 = scmp.lt.s32.totalorder (!%p171_p3), %s591_s22, 63  ;;  %v248_v6 = vld [vmem:[%s970_s1 + $0x20] sm:$0xff] (!%p171_p3)  ;;  %v249_v7 = vld [vmem:[%s970_s1 + $0x28] sm:$0xff] (!%p171_p3) }
   0x8   : > { %v691_v5 = vpack.c.bf16 (!%p171_p3), %v247_v4, %v246_v2  ;;  %v695_v8 = vpack.c.bf16 (!%p171_p3), %v249_v7, %v248_v6  ;;  %v250_v9 = vld [vmem:[%s970_s1 + $0x30] sm:$0xff] (!%p171_p3)  ;;  %v251_v10 = vld [vmem:[%s970_s1 + $0x38] sm:$0xff] (!%p171_p3)  ;;  %v252_v14 = vld [vmem:[%s970_s1 + $0x40] sm:$0xff] (!%p171_p3) }
   0x9   : > { %688 = vmatprep.subr.bf16.mxu0 (!%p171_p3), %v687_v3  ;;  %719 = vmatprep.subr.bf16.mxu1 (!%p171_p3), %v687_v3  ;;  %v699_v13 = vpack.c.bf16 (!%p171_p3), %v251_v10, %v250_v9  ;;  %v253_v15 = vld [vmem:[%s970_s1 + $0x48] sm:$0xff] (!%p171_p3)  ;;  %v254_v17 = vld [vmem:[%s970_s1 + $0x50] sm:$0xff] (!%p171_p3)  ;;  %v255_v18 = vld [vmem:[%s970_s1 + $0x58] sm:$0xff] (!%p171_p3) }
   0xa   : > { %690 = vmatpush3.bf16.msra.mxu0 (!%p171_p3), %v687_v3  ;;  %727 = vmatpush3.bf16.msra.mxu1 (!%p171_p3), %v687_v3  ;;  %v703_v16 = vpack.c.bf16 (!%p171_p3), %v253_v15, %v252_v14  ;;  %v707_v19 = vpack.c.bf16 (!%p171_p3), %v255_v18, %v254_v17  ;;  %v256_v20 = vld [vmem:[%s970_s1 + $0x60] sm:$0xff] (!%p171_p3)  ;;  %v257_v21 = vld [vmem:[%s970_s1 + $0x68] sm:$0xff] (!%p171_p3)  ;;  %v258_v23 = vld [vmem:[%s970_s1 + $0x70] sm:$0xff] (!%p171_p3) }
   0xb   : > { %692 = vmatprep.subr.bf16.mxu0 (!%p171_p3), %v691_v5  ;;  %720 = vmatprep.subr.bf16.mxu1 (!%p171_p3), %v691_v5  ;;  %v711_v22 = vpack.c.bf16 (!%p171_p3), %v257_v21, %v256_v20  ;;  %v259_v24 = vld [vmem:[%s970_s1 + $0x78] sm:$0xff] (!%p171_p3)  ;;  %v898_v40 = vld [vmem:[%s971_s2] ss:$0 sm:$0xff] (!%p171_p3)  ;;  %v903_v42 = vld [vmem:[%s971_s2 + $0x1] ss:$0 sm:$0xff] (!%p171_p3) }
   0xc   : > { %v715_v25 = vpack.c.bf16 (!%p171_p3), %v259_v24, %v258_v23 }
   0xe   : > { %s978_s22 = smov (!%p206_p4, %s591_s22), 63  ;;  %694 = vmatpush3.bf16.msra.mxu0 %v691_v5  ;;  %728 = vmatpush3.bf16.msra.mxu1 %v691_v5 }
   0xf   : > { %s592_s29 = sshll.u32 %s978_s22, 3  ;;  %696 = vmatprep.subr.bf16.mxu0 %v695_v8  ;;  %721 = vmatprep.subr.bf16.mxu1 %v695_v8 }
  0x10   : > { %s853_s9 = scalar_lea.vmem %s969_s0, %s592_s29  ;;  %s916_s10 = scalar_lea.vmem %s972_s3, %s592_s29 }
  0x11   : > { %v228_v11 = vld [vmem:[%s853_s9] sm:$0xff]  ;;  %v229_v26 = vld [vmem:[%s853_s9 + $0x8] sm:$0xff]  ;;  %v230_v28 = vld [vmem:[%s853_s9 + $0x10] sm:$0xff] }
  0x12   : > { %v236_v12 = vld [vmem:[%s853_s9 + $0x40] sm:$0xff]  ;;  %663 = vmatprep.mubr.f32.mxu0 %v228_v11  ;;  %698 = vmatpush3.bf16.msra.mxu0 %v695_v8  ;;  %v237_v27 = vld [vmem:[%s853_s9 + $0x48] sm:$0xff]  ;;  %v238_v29 = vld [vmem:[%s853_s9 + $0x50] sm:$0xff] }
  0x13   : > { %675 = vmatprep.mubr.f32.mxu1 %v236_v12  ;;  %729 = vmatpush3.bf16.msra.mxu1 %v695_v8  ;;  %v231_v30 = vld [vmem:[%s853_s9 + $0x18] sm:$0xff]  ;;  %v232_v32 = vld [vmem:[%s853_s9 + $0x20] sm:$0xff]  ;;  %v233_v34 = vld [vmem:[%s853_s9 + $0x28] sm:$0xff] }
  0x14   : > { %700 = vmatprep.subr.bf16.mxu0 %v699_v13  ;;  %722 = vmatprep.subr.bf16.mxu1 %v699_v13  ;;  %v239_v31 = vld [vmem:[%s853_s9 + $0x58] sm:$0xff]  ;;  %v240_v33 = vld [vmem:[%s853_s9 + $0x60] sm:$0xff]  ;;  %v241_v35 = vld [vmem:[%s853_s9 + $0x68] sm:$0xff] }
  0x15   : > { %v234_v36 = vld [vmem:[%s853_s9 + $0x30] sm:$0xff]  ;;  %v235_v38 = vld [vmem:[%s853_s9 + $0x38] sm:$0xff] }
  0x16   : > { %702 = vmatpush3.bf16.msra.mxu0 %v699_v13  ;;  %v242_v37 = vld [vmem:[%s853_s9 + $0x70] sm:$0xff]  ;;  %v243_v39 = vld [vmem:[%s853_s9 + $0x78] sm:$0xff] }
  0x17   : > { %730 = vmatpush3.bf16.msra.mxu1 %v699_v13  ;;  %704 = vmatprep.subr.bf16.mxu0 %v703_v16 }
  0x18   : > { %723 = vmatprep.subr.bf16.mxu1 %v703_v16 }
  0x1a   : > { %706 = vmatpush3.bf16.msra.mxu0 %v703_v16 }
  0x1b   : > { %731 = vmatpush3.bf16.msra.mxu1 %v703_v16  ;;  %708 = vmatprep.subr.bf16.mxu0 %v707_v19 }
  0x1c   : > { %724 = vmatprep.subr.bf16.mxu1 %v707_v19 }
  0x1e   : > { %710 = vmatpush3.bf16.msra.mxu0 %v707_v19 }
  0x1f   : > { %732 = vmatpush3.bf16.msra.mxu1 %v707_v19  ;;  %712 = vmatprep.subr.bf16.mxu0 %v711_v22 }
  0x20   : > { %725 = vmatprep.subr.bf16.mxu1 %v711_v22 }
  0x22   : > { %714 = vmatpush3.bf16.msra.mxu0 %v711_v22 }
  0x23   : > { %733 = vmatpush3.bf16.msra.mxu1 %v711_v22  ;;  %716 = vmatprep.subr.bf16.mxu0 %v715_v25 }
  0x24   : > { %726 = vmatprep.subr.bf16.mxu1 %v715_v25 }
  0x26   : > { %718 = vmatpush3.bf16.msra.mxu0 %v715_v25 }
  0x27   : > { %734 = vmatpush3.bf16.msra.mxu1 %v715_v25 }
  0x29   : > { %664 = vmatmul.mubr.f32.vlgmr.msra.gmra.mrb[0].mxu0 %v229_v26 }
  0x2a   : > { %676 = vmatmul.mubr.f32.vlgmr.msra.gmra.mrb[0].mxu1 %v237_v27  ;;  %666 = vmatprep.mubr.f32.mxu0 %v230_v28 }
  0x2b   : > { %678 = vmatprep.mubr.f32.mxu1 %v238_v29 }
  0x2d   : > { %667 = vmatmul.mubr.f32.gmra.mrb[2].mxu0 %v231_v30 }
  0x2e   : > { %679 = vmatmul.mubr.f32.gmra.mrb[2].mxu1 %v239_v31  ;;  %669 = vmatprep.mubr.f32.mxu0 %v232_v32 }
  0x2f   : > { %681 = vmatprep.mubr.f32.mxu1 %v240_v33 }
  0x31   : > { %670 = vmatmul.mubr.f32.gmra.mrb[4].mxu0 %v233_v34 }
  0x32   : > { %682 = vmatmul.mubr.f32.gmra.mrb[4].mxu1 %v241_v35  ;;  %672 = vmatprep.mubr.f32.mxu0 %v234_v36 }
  0x33   : > { %684 = vmatprep.mubr.f32.mxu1 %v242_v37 }
  0x35   : > { %673 = vmatmul.mubr.f32.gmra.mrb[6].mxu0 %v235_v38 }
  0x36   : > { %685 = vmatmul.mubr.f32.gmra.mrb[6].mxu1 %v243_v39 }
  0xfc   : > { %v665_v41 = vpop.f32.mrb[0].mxu0 }
  0xfd   : > { %v677_v43 = vpop.f32.mrb[0].mxu1  ;;  %v411_v44 = vmul.f32 %v665_v41, %v898_v40  ;;  %v326_v46 = vpop.f32.mrb[1].mxu0 }
  0xfe   : > { %v419_v45 = vmul.f32 %v677_v43, %v898_v40  ;;  %v366_v47 = vpop.f32.mrb[1].mxu1  ;;  %v410_v48 = vmul.f32 %v898_v40, %v326_v46 }
  0xff   : > { %v418_v49 = vmul.f32 %v898_v40, %v366_v47  ;;  %v432_v50 = vadd.f32 %v903_v42, %v411_v44 }
 0x100   : > { %v440_v51 = vadd.f32 %v903_v42, %v419_v45  ;;  %v431_v52 = vadd.f32 %v903_v42, %v410_v48  ;;  %v668_v54 = vpop.f32.mrb[2].mxu0 }
 0x101   : > { %v439_v53 = vadd.f32 %v903_v42, %v418_v49  ;;  %v680_v55 = vpop.f32.mrb[2].mxu1  ;;  %v448_v56 = vmax.f32 %v432_v50, 0.0  ;;  %v413_v58 = vmul.f32 %v668_v54, %v898_v40  ;;  %v336_v60 = vpop.f32.mrb[3].mxu0 }
 0x102   : > { %v456_v57 = vmax.f32 %v440_v51, 0.0  ;;  %v421_v59 = vmul.f32 %v680_v55, %v898_v40  ;;  %v376_v61 = vpop.f32.mrb[3].mxu1  ;;  %v447_v62 = vmax.f32 %v431_v52, 0.0  ;;  %v412_v0 = vmul.f32 %v898_v40, %v336_v60 }
 0x103   : > { %v455_v63 = vmax.f32 %v439_v53, 0.0  ;;  %v420_v1 = vmul.f32 %v898_v40, %v376_v61  ;;  %464 = vst [vmem:[%s916_s10 + $0x8] sm:$0xff] %v448_v56  ;;  %v434_v2 = vadd.f32 %v903_v42, %v413_v58 }
 0x104   : > { %472 = vst [vmem:[%s916_s10 + $0x48] sm:$0xff] %v456_v57  ;;  %v442_v3 = vadd.f32 %v903_v42, %v421_v59  ;;  %463 = vst [vmem:[%s916_s10] sm:$0xff] %v447_v62  ;;  %v433_v4 = vadd.f32 %v903_v42, %v412_v0  ;;  %v671_v6 = vpop.f32.mrb[4].mxu0 }
 0x105   : > { %471 = vst [vmem:[%s916_s10 + $0x40] sm:$0xff] %v455_v63  ;;  %v441_v5 = vadd.f32 %v903_v42, %v420_v1  ;;  %v683_v7 = vpop.f32.mrb[4].mxu1  ;;  %v450_v8 = vmax.f32 %v434_v2, 0.0  ;;  %v415_v10 = vmul.f32 %v671_v6, %v898_v40  ;;  %v346_v12 = vpop.f32.mrb[5].mxu0 }
 0x106   : > { %v458_v9 = vmax.f32 %v442_v3, 0.0  ;;  %v423_v11 = vmul.f32 %v683_v7, %v898_v40  ;;  %v386_v13 = vpop.f32.mrb[5].mxu1  ;;  %v449_v14 = vmax.f32 %v433_v4, 0.0  ;;  %v414_v16 = vmul.f32 %v898_v40, %v346_v12 }
 0x107   : > { %v457_v15 = vmax.f32 %v441_v5, 0.0  ;;  %v422_v17 = vmul.f32 %v898_v40, %v386_v13  ;;  %466 = vst [vmem:[%s916_s10 + $0x18] sm:$0xff] %v450_v8  ;;  %v436_v18 = vadd.f32 %v903_v42, %v415_v10 }
 0x108   : > { %474 = vst [vmem:[%s916_s10 + $0x58] sm:$0xff] %v458_v9  ;;  %v444_v19 = vadd.f32 %v903_v42, %v423_v11  ;;  %465 = vst [vmem:[%s916_s10 + $0x10] sm:$0xff] %v449_v14  ;;  %v435_v20 = vadd.f32 %v903_v42, %v414_v16  ;;  %v674_v22 = vpop.f32.mrb[6].mxu0 }
 0x109   : > { %473 = vst [vmem:[%s916_s10 + $0x50] sm:$0xff] %v457_v15  ;;  %v443_v21 = vadd.f32 %v903_v42, %v422_v17  ;;  %v686_v23 = vpop.f32.mrb[6].mxu1  ;;  %v452_v24 = vmax.f32 %v436_v18, 0.0  ;;  %v417_v26 = vmul.f32 %v674_v22, %v898_v40  ;;  %v356_v28 = vpop.f32.mrb[7].mxu0 }
 0x10a   : > { %v460_v25 = vmax.f32 %v444_v19, 0.0  ;;  %v425_v27 = vmul.f32 %v686_v23, %v898_v40  ;;  %v396_v29 = vpop.f32.mrb[7].mxu1  ;;  %v451_v30 = vmax.f32 %v435_v20, 0.0  ;;  %v416_v32 = vmul.f32 %v898_v40, %v356_v28 }
 0x10b   : > { %v459_v31 = vmax.f32 %v443_v21, 0.0  ;;  %v424_v33 = vmul.f32 %v898_v40, %v396_v29  ;;  %468 = vst [vmem:[%s916_s10 + $0x28] sm:$0xff] %v452_v24  ;;  %v438_v34 = vadd.f32 %v903_v42, %v417_v26 }
 0x10c   : > { %476 = vst [vmem:[%s916_s10 + $0x68] sm:$0xff] %v460_v25  ;;  %v446_v35 = vadd.f32 %v903_v42, %v425_v27  ;;  %467 = vst [vmem:[%s916_s10 + $0x20] sm:$0xff] %v451_v30  ;;  %v437_v36 = vadd.f32 %v903_v42, %v416_v32 }
 0x10d   : > { %475 = vst [vmem:[%s916_s10 + $0x60] sm:$0xff] %v459_v31  ;;  %v445_v37 = vadd.f32 %v903_v42, %v424_v33  ;;  %v454_v38 = vmax.f32 %v438_v34, 0.0 }
 0x10e   : > { %v462_v39 = vmax.f32 %v446_v35, 0.0  ;;  %v453_v41 = vmax.f32 %v437_v36, 0.0 }
 0x10f   : > { %v461_v43 = vmax.f32 %v445_v37, 0.0  ;;  %470 = vst [vmem:[%s916_s10 + $0x38] sm:$0xff] %v454_v38 }
 0x110   : > { %478 = vst [vmem:[%s916_s10 + $0x78] sm:$0xff] %v462_v39  ;;  %469 = vst [vmem:[%s916_s10 + $0x30] sm:$0xff] %v453_v41 }
 0x111   : > { %477 = vst [vmem:[%s916_s10 + $0x70] sm:$0xff] %v461_v43 }
 0x112 PF: > { %s13_s14 = sadd.s32 1, %s781_s14   ;;  %s973_s12 = smov %s777_s13 }
 0x113   : > { %p10_p5 = scmp.ge.s32.totalorder %s13_s14, 6   ;;  %s974_s13 = smov %s976_s15 }
 0x115   :  { %12 = sbr.rel (!%p10_p5) target bundleno = 2 (0x2), region = 68 }

</bundles_post_ra>
